<compile_context>
chip_gen: v7x
topology: tpu7x:2x2x1
jax: 0.10.0
libtpu: 0.0.40
codegen_flags: <defaults>
</compile_context>

<pallas_src>
import jax
import jax.numpy as jnp
from jax.experimental import pallas as pl
from jax.experimental.pallas import tpu as pltpu


def _round_up(x, m):
    return ((x + m - 1) // m) * m


def _mlp_kernel(x_ref, w1_ref, b1_ref, w2_ref, b2_ref, w3_ref, b3_ref, o_ref):
    # Cast the streamed f32 tile to bf16 at the MXU input (in-kernel cast:
    # avoids a standalone XLA bf16 copy of x in HBM).
    x = x_ref[...].astype(jnp.bfloat16)

    # Layer 1: (tb, F) @ (F, H1), f32 accumulate; f32 bias + ReLU.
    h1 = jnp.dot(x, w1_ref[...], preferred_element_type=jnp.float32)
    h1 = jnp.maximum(h1 + b1_ref[...], 0.0)
    # dropout1: identity (eval mode)

    # Layer 2.
    h2 = jnp.dot(h1.astype(jnp.bfloat16), w2_ref[...],
                 preferred_element_type=jnp.float32)
    h2 = jnp.maximum(h2 + b2_ref[...], 0.0)
    # dropout2: identity (eval mode)

    # Output layer.
    logits = jnp.dot(h2.astype(jnp.bfloat16), w3_ref[...],
                     preferred_element_type=jnp.float32)
    logits = logits + b3_ref[...]                      # (tb, C)

    # Lane-dense store: transpose (tb, C=4) -> (C, tb) so the final store
    # writes full 128-lane rows instead of masked partial stores.
    logits_t = logits.T                                # cheap XLU transpose

    # Numerically stable log_softmax over the class axis (now axis=0), f32.
    m = jnp.max(logits_t, axis=0, keepdims=True)       # (1, tb)
    shifted = logits_t - m
    lse = jnp.log(jnp.sum(jnp.exp(shifted), axis=0, keepdims=True))
    o_ref[...] = (shifted - lse).astype(o_ref.dtype)


def mlp_forward(x, w1, b1, w2, b2, w3, b3, *, block_batch=1024):
    """x: [B, n_features] f32; weights [in, out] f32; biases [1, out] f32."""
    B, F = x.shape
    H1 = w1.shape[1]
    H2 = w2.shape[1]
    C = w3.shape[1]

    # Resident params: cast weights to bf16 once (tiny, ~20 KB); biases f32.
    w1b = w1.astype(jnp.bfloat16)
    w2b = w2.astype(jnp.bfloat16)
    w3b = w3.astype(jnp.bfloat16)

    # Batch tile. For B <= 128 use a single full block (block dims == array
    # dims satisfies the (8,128) rule). For larger B keep tb a multiple of 128
    # (lane-aligned transposed output block) and force >= 2 blocks so v7x can
    # use both TensorCores on the "parallel" batch axis.
    if B <= 128:
        tb = B
    else:
        tb = min(_round_up(block_batch, 128), _round_up(pl.cdiv(B, 2), 128))
    n_blocks = pl.cdiv(B, tb)   # ragged last block handled by Pallas (no pad)

    def const_spec(a):
        return pl.BlockSpec(a.shape, lambda i: (0, 0))

    flops = 2 * B * (F * H1 + H1 * H2 + H2 * C)
    bytes_accessed = (
        x.size * 4 + B * C * 4                      # streamed f32 x / f32 out
        + (w1b.size + w2b.size + w3b.size) * 2      # resident bf16 weights
        + (b1.size + b2.size + b3.size) * 4         # f32 biases
    )

    out_t = pl.pallas_call(
        _mlp_kernel,
        out_shape=jax.ShapeDtypeStruct((C, B), jnp.float32),
        grid=(n_blocks,),
        in_specs=[
            pl.BlockSpec((tb, F), lambda i: (i, 0)),   # streamed f32 x tile
            const_spec(w1b), const_spec(b1),           # VMEM-resident params
            const_spec(w2b), const_spec(b2),
            const_spec(w3b), const_spec(b3),
        ],
        out_specs=pl.BlockSpec((C, tb), lambda i: (0, i)),   # lane-dense slab
        compiler_params=pltpu.CompilerParams(
            dimension_semantics=("parallel",)),
        cost_estimate=pl.CostEstimate(
            flops=flops,
            transcendentals=B * (C + 1),               # exp/log in log_softmax
            bytes_accessed=bytes_accessed),
    )(x, w1b, b1, w2b, b2, w3b, b3)

    # Back to the module's (B, C) layout; tiny (B*C*4 bytes) XLA transpose.
    return out_t.T


def _ref_forward(x, w1, b1, w2, b2, w3, b3):
    h1 = jnp.maximum(x @ w1 + b1, 0.0)
    h2 = jnp.maximum(h1 @ w2 + b2, 0.0)
    return jax.nn.log_softmax(h2 @ w3 + b3, axis=1)


def init_params(key, n_features, n_neurons, n_classes=4):
    """Deterministic init mimicking nn.Linear's uniform(-1/sqrt(fan_in), ...)."""
    ks = jax.random.split(key, 6)
    dims = [(n_features, n_neurons[0]),
            (n_neurons[0], n_neurons[1]),
            (n_neurons[1], n_classes)]
    params = []
    for i, (fan_in, fan_out) in enumerate(dims):
        bound = 1.0 / (fan_in ** 0.5)
        w = jax.random.uniform(ks[2 * i], (fan_in, fan_out),
                               minval=-bound, maxval=bound, dtype=jnp.float32)
        b = jax.random.uniform(ks[2 * i + 1], (1, fan_out),
                               minval=-bound, maxval=bound, dtype=jnp.float32)
        params.extend([w, b])
    return params


if __name__ == "__main__":
    key = jax.random.PRNGKey(0)
    k_x, k_p = jax.random.split(key)

    batch = 8
    n_features = 32
    n_neurons = [64, 32]
    # dropouts = [0.1, 0.1]  # inactive in eval mode

    x = jax.random.normal(k_x, (batch, n_features), dtype=jnp.float32)
    w1, b1, w2, b2, w3, b3 = init_params(k_p, n_features, n_neurons)

    out = mlp_forward(x, w1, b1, w2, b2, w3, b3)
    out = jax.block_until_ready(out)

    assert out.shape == (batch, 4)

    # log_softmax rows should exp-sum to ~1
    row_sums = jnp.sum(jnp.exp(out), axis=1)
    assert bool(jnp.all(jnp.abs(row_sums - 1.0) < 1e-3))

    # compare against pure-JAX f32 reference (bf16 MXU inputs -> loose tol)
    ref = _ref_forward(x, w1, b1, w2, b2, w3, b3)
    assert bool(jnp.max(jnp.abs(out - ref)) < 5e-2)

    print("KERNEL_OK")
</pallas_src>

<mosaic_0001>
module attributes {stable_mosaic.version = 11 : i64} {
  func.func @_mlp_kernel(%arg0: i32, %arg1: memref<8x32xf32, #tpu.memory_space<vmem>>, %arg2: memref<32x64xbf16, #tpu.memory_space<vmem>>, %arg3: memref<1x64xf32, #tpu.memory_space<vmem>>, %arg4: memref<64x32xbf16, #tpu.memory_space<vmem>>, %arg5: memref<1x32xf32, #tpu.memory_space<vmem>>, %arg6: memref<32x4xbf16, #tpu.memory_space<vmem>>, %arg7: memref<1x4xf32, #tpu.memory_space<vmem>>, %arg8: memref<4x8xf32, #tpu.memory_space<vmem>>) attributes {dimension_semantics = [#tpu.dimension_semantics<parallel>], iteration_bounds = array<i64: 1>, scalar_prefetch = 0 : i64, scratch_operands = 0 : i64, tpu.core_type = #tpu.core_type<tc>, window_params = [{transform_indices = @transform_0, window_bounds = array<i64: 8, 32>}, {pipeline_mode = #tpu.pipeline_mode<synchronous>, transform_indices = @transform_1, window_bounds = array<i64: 32, 64>}, {pipeline_mode = #tpu.pipeline_mode<synchronous>, transform_indices = @transform_2, window_bounds = array<i64: 1, 64>}, {pipeline_mode = #tpu.pipeline_mode<synchronous>, transform_indices = @transform_3, window_bounds = array<i64: 64, 32>}, {pipeline_mode = #tpu.pipeline_mode<synchronous>, transform_indices = @transform_4, window_bounds = array<i64: 1, 32>}, {pipeline_mode = #tpu.pipeline_mode<synchronous>, transform_indices = @transform_5, window_bounds = array<i64: 32, 4>}, {pipeline_mode = #tpu.pipeline_mode<synchronous>, transform_indices = @transform_6, window_bounds = array<i64: 1, 4>}, {transform_indices = @transform_7, window_bounds = array<i64: 4, 8>}]} {
    %c0 = arith.constant 0 : index
    %c0_0 = arith.constant 0 : index
    %0 = vector.load %arg1[%c0, %c0_0] : memref<8x32xf32, #tpu.memory_space<vmem>>, vector<8x32xf32>
    %1 = arith.truncf %0 : vector<8x32xf32> to vector<8x32xbf16>
    %c0_1 = arith.constant 0 : index
    %c0_2 = arith.constant 0 : index
    %2 = vector.load %arg2[%c0_1, %c0_2] : memref<32x64xbf16, #tpu.memory_space<vmem>>, vector<32x64xbf16>
    %cst = arith.constant dense<0.000000e+00> : vector<8x64xf32>
    %3 = tpu.matmul %1, %2, %cst {dimension_numbers = #tpu.dot_dimension_numbers<[1], [0], [0], [1], [0, 0, 1, 1], [], []>} : vector<8x32xbf16>, vector<32x64xbf16>, vector<8x64xf32> -> vector<8x64xf32>
    %c0_3 = arith.constant 0 : index
    %c0_4 = arith.constant 0 : index
    %4 = vector.load %arg3[%c0_3, %c0_4] : memref<1x64xf32, #tpu.memory_space<vmem>>, vector<1x64xf32>
    %5 = vector.broadcast %4 : vector<1x64xf32> to vector<8x64xf32>
    %6 = arith.addf %3, %5 : vector<8x64xf32>
    %cst_5 = arith.constant 0.000000e+00 : f32
    %7 = vector.broadcast %cst_5 : f32 to vector<8x64xf32>
    %8 = arith.maximumf %6, %7 : vector<8x64xf32>
    %9 = arith.truncf %8 : vector<8x64xf32> to vector<8x64xbf16>
    %c0_6 = arith.constant 0 : index
    %c0_7 = arith.constant 0 : index
    %10 = vector.load %arg4[%c0_6, %c0_7] : memref<64x32xbf16, #tpu.memory_space<vmem>>, vector<64x32xbf16>
    %cst_8 = arith.constant dense<0.000000e+00> : vector<8x32xf32>
    %11 = tpu.matmul %9, %10, %cst_8 {dimension_numbers = #tpu.dot_dimension_numbers<[1], [0], [0], [1], [0, 0, 1, 1], [], []>} : vector<8x64xbf16>, vector<64x32xbf16>, vector<8x32xf32> -> vector<8x32xf32>
    %c0_9 = arith.constant 0 : index
    %c0_10 = arith.constant 0 : index
    %12 = vector.load %arg5[%c0_9, %c0_10] : memref<1x32xf32, #tpu.memory_space<vmem>>, vector<1x32xf32>
    %13 = vector.broadcast %12 : vector<1x32xf32> to vector<8x32xf32>
    %14 = arith.addf %11, %13 : vector<8x32xf32>
    %cst_11 = arith.constant 0.000000e+00 : f32
    %15 = vector.broadcast %cst_11 : f32 to vector<8x32xf32>
    %16 = arith.maximumf %14, %15 : vector<8x32xf32>
    %17 = arith.truncf %16 : vector<8x32xf32> to vector<8x32xbf16>
    %c0_12 = arith.constant 0 : index
    %c0_13 = arith.constant 0 : index
    %18 = vector.load %arg6[%c0_12, %c0_13] : memref<32x4xbf16, #tpu.memory_space<vmem>>, vector<32x4xbf16>
    %cst_14 = arith.constant dense<0.000000e+00> : vector<8x4xf32>
    %19 = tpu.matmul %17, %18, %cst_14 {dimension_numbers = #tpu.dot_dimension_numbers<[1], [0], [0], [1], [0, 0, 1, 1], [], []>} : vector<8x32xbf16>, vector<32x4xbf16>, vector<8x4xf32> -> vector<8x4xf32>
    %c0_15 = arith.constant 0 : index
    %c0_16 = arith.constant 0 : index
    %20 = vector.load %arg7[%c0_15, %c0_16] : memref<1x4xf32, #tpu.memory_space<vmem>>, vector<1x4xf32>
    %21 = vector.broadcast %20 : vector<1x4xf32> to vector<8x4xf32>
    %22 = arith.addf %19, %21 : vector<8x4xf32>
    %23 = tpu.transpose %22, [1, 0] : vector<8x4xf32> -> vector<4x8xf32>
    %cst_17 = arith.constant dense<0xFF800000> : vector<8xf32>
    %24 = vector.multi_reduction <maximumf>, %23, %cst_17 [0] : vector<4x8xf32> to vector<8xf32>
    %25 = vector.shape_cast %24 : vector<8xf32> to vector<1x8xf32>
    %26 = vector.broadcast %25 : vector<1x8xf32> to vector<4x8xf32>
    %27 = arith.subf %23, %26 : vector<4x8xf32>
    %28 = math.exp %27 : vector<4x8xf32>
    %cst_18 = arith.constant dense<0.000000e+00> : vector<8xf32>
    %29 = vector.multi_reduction <add>, %28, %cst_18 [0] : vector<4x8xf32> to vector<8xf32>
    %30 = vector.shape_cast %29 : vector<8xf32> to vector<1x8xf32>
    %31 = math.log %30 : vector<1x8xf32>
    %32 = vector.broadcast %31 : vector<1x8xf32> to vector<4x8xf32>
    %33 = arith.subf %27, %32 : vector<4x8xf32>
    %c0_19 = arith.constant 0 : index
    %c0_20 = arith.constant 0 : index
    %34 = vector.load %arg8[%c0_19, %c0_20] : memref<4x8xf32, #tpu.memory_space<vmem>>, vector<4x8xf32>
    tpu.vector_store %arg8[%c0_19, %c0_20], %33 {strides = array<i32>} : memref<4x8xf32, #tpu.memory_space<vmem>>, vector<4x8xf32>,
    return
  }
  func.func @transform_0(%arg0: i32) -> (i32, i32) {
    %c0_i32 = arith.constant 0 : i32
    %c0_i32_0 = arith.constant 0 : i32
    return %arg0, %c0_i32 : i32, i32
  }
  func.func @transform_1(%arg0: i32) -> (i32, i32) {
    %c0_i32 = arith.constant 0 : i32
    %c0_i32_0 = arith.constant 0 : i32
    %c0_i32_1 = arith.constant 0 : i32
    return %c0_i32, %c0_i32_0 : i32, i32
  }
  func.func @transform_2(%arg0: i32) -> (i32, i32) {
    %c0_i32 = arith.constant 0 : i32
    %c0_i32_0 = arith.constant 0 : i32
    %c0_i32_1 = arith.constant 0 : i32
    return %c0_i32, %c0_i32_0 : i32, i32
  }
  func.func @transform_3(%arg0: i32) -> (i32, i32) {
    %c0_i32 = arith.constant 0 : i32
    %c0_i32_0 = arith.constant 0 : i32
    %c0_i32_1 = arith.constant 0 : i32
    return %c0_i32, %c0_i32_0 : i32, i32
  }
  func.func @transform_4(%arg0: i32) -> (i32, i32) {
    %c0_i32 = arith.constant 0 : i32
    %c0_i32_0 = arith.constant 0 : i32
    %c0_i32_1 = arith.constant 0 : i32
    return %c0_i32, %c0_i32_0 : i32, i32
  }
  func.func @transform_5(%arg0: i32) -> (i32, i32) {
    %c0_i32 = arith.constant 0 : i32
    %c0_i32_0 = arith.constant 0 : i32
    %c0_i32_1 = arith.constant 0 : i32
    return %c0_i32, %c0_i32_0 : i32, i32
  }
  func.func @transform_6(%arg0: i32) -> (i32, i32) {
    %c0_i32 = arith.constant 0 : i32
    %c0_i32_0 = arith.constant 0 : i32
    %c0_i32_1 = arith.constant 0 : i32
    return %c0_i32, %c0_i32_0 : i32, i32
  }
  func.func @transform_7(%arg0: i32) -> (i32, i32) {
    %c0_i32 = arith.constant 0 : i32
    %c0_i32_0 = arith.constant 0 : i32
    return %c0_i32, %arg0 : i32, i32
  }
}

</mosaic_0001>

<bundles_post_ra>
// kernel: tpu_custom_call.1
= control target key start
LH: loop header
LB: loop body
LE: loop exit
PB: predicated region body
PF: predicated region fallthrough
CT: control target
= control target key end

     0   :  { %v410_v1 = vmov 0.0   ;;  %vm411_vm0 = vmmov 0   ;;  %vm53_vm1 = vcmask 261120   ;;  %s509_s0 = inlined_call_operand.vmem [shape: f32[8,32], index: 0, kind: input, shape index: {}]   ;;  %s510_s1 = inlined_call_operand.vmem [shape: bf16[32,64], index: 1, kind: input, shape index: {}]   ;;  %s511_s2 = inlined_call_operand.vmem [shape: f32[1,64], index: 2, kind: input, shape index: {}]   ;;  %s512_s3 = inlined_call_operand.vmem [shape: bf16[64,32], index: 3, kind: input, shape index: {}]   ;;  %s513_s4 = inlined_call_operand.vmem [shape: f32[1,32], index: 4, kind: input, shape index: {}]   ;;  %s514_s5 = inlined_call_operand.vmem [shape: bf16[32,4], index: 5, kind: input, shape index: {}]   ;;  %s515_s6 = inlined_call_operand.vmem [shape: f32[1,4], index: 6, kind: input, shape index: {}]   ;;  %s516_s7 = inlined_call_operand.hbm [shape: f32[4,8], index: 7, kind: output, shape index: {}]  }
   0x1   :  { %v374_v0 = vld [vmem:[%s510_s1] sm:$0xff]   ;;  %343 = vmatprep.subr.bf16.mxu0 %v410_v1  ;;  %v375_v2 = vld [vmem:[%s510_s1 + $0x8] sm:$0xff]   ;;  %351 = vmatprep.subr.bf16.mxu1 %v410_v1 }
   0x2   :  { %344 = vmatpush3.bf16.msra.mxu0 %v374_v0  ;;  %347 = vmatprep.mubr.msk.bf16.mxu0 %vm411_vm0, %v410_v1  ;;  %v28_v3 = vld [vmem:[%s509_s0] sm:$0xff]  ;;  %v377_v5 = vld [vmem:[%s512_s3 + $0x8] sm:$0xff]  }
   0x3   :  { %345 = vmatprep.subr.bf16.mxu0 %v410_v1  ;;  %v376_v4 = vld [vmem:[%s512_s3] sm:$0xff]   ;;  %359 = vmatprep.mubr.msk.bf16.mxu1 %vm411_vm0, %v410_v1  ;;  %v29_v6 = vpack.c.bf16 %v28_v3, %v28_v3 }
   0x4   :  { %352 = vmatpush3.bf16.msra.mxu1 %v376_v4 }
   0x5   :  { %353 = vmatprep.subr.bf16.mxu1 %v410_v1 }
   0x6   :  { %346 = vmatpush3.bf16.msra.mxu0 %v375_v2 }
   0x7   :  { %363 = vmatprep.subr.bf16.mxu0 %v410_v1 }
   0x8   :  { %12 = vsyncpa [#allocation3], 0  ;;  %354 = vmatpush3.bf16.msra.mxu1 %v377_v5  ;;  %v378_v7 = vld [vmem:[%s512_s3 + $0x10] sm:$0xff]   ;;  %v379_v8 = vld [vmem:[%s512_s3 + $0x18] sm:$0xff]   ;;  %vm138_vm2 = vcmask 523264   ;;  %vm282_vm3 = vcmask 60416  }
   0x9   :  { %348 = vmatmul.mubr.msk.bf16.vlgmr.msra.gmra.mrb[0].mxu0 %vm53_vm1, %v29_v6  ;;  %355 = vmatprep.subr.bf16.mxu1 %v410_v1  ;;  %v380_v9 = vld [vmem:[%s514_s5] sm:$0xff]   ;;  %v381_v18 = vld [vmem:[%s514_s5 + $0x8] sm:$0xff]  }
   0xa   :  { %367 = vmatprep.mubr.msk.bf16.mxu0 %vm411_vm0, %v410_v1  ;;  %364 = vmatpush3.bf16.msra.mxu0 %v380_v9  ;;  %v318_v10 = vld [vmem:[%s511_s2] ss:$0 sm:$0xff] }
   0xb   :  { %365 = vmatprep.subr.bf16.mxu0 %v410_v1  ;;  %v322_v19 = vld [vmem:[%s513_s4] ss:$0 sm:$0xff]  ;;  %s412_s4 = smov [#allocation2]  }
   0xc   :  { %356 = vmatpush3.bf16.msra.mxu1 %v378_v7  ;;  %v328_v27 = vld [vmem:[%s515_s6] ss:$0 sm:$0xff]  ;;  %s310_s5 = sshll.u32 %s412_s4, 4  ;;  %s311_s5 = int_to_ptr.vmem [resolvable:$true] %s310_s5 }
   0xd   :  { %357 = vmatprep.subr.bf16.mxu1 %v410_v1  ;;  %s386_s6 = scalar_lea.vmem %s311_s5, 64  ;;  %p391_p1 = scmp.lt.s32.totalorder %s311_s5, %s311_s5 }
   0xe   :  { %366 = vmatpush3.bf16.msra.mxu0 %v381_v18  ;;  %p387_p0 = scmp.ne.s32.totalorder %s311_s5, %s386_s6  ;;  %p392_p2 = scmp.lt.s32.totalorder %s386_s6, %s386_s6 }
  0x10   :  { %358 = vmatpush3.bf16.msra.mxu1 %v379_v8  ;;  %p393_p3 = por %p392_p2, %p391_p1 }
  0x12   :  { %p394_p4 = pnand %p393_p3, %p387_p0 }
  0xdc   :  { %v91_v11 = vpop.f32.mrb[0].mxu0 }
  0xdd   :  { %v92_v12 = vadd.f32 %v318_v10, %v91_v11  ;;  %v349_v13 = vpop.f32.mrb[1].mxu0 }
  0xde   :  { %v94_v14 = vpop.f32.mrb[2].mxu0 }
  0xdf   :  { %v97_v15 = vmax.f32 %v92_v12, 0.0  ;;  %v350_v16 = vpop.f32.mrb[3].mxu0 }
  0xe1   :  { %v98_v17 = vpack.c.bf16 %v97_v15, %v97_v15 }
  0xe3   :  { %360 = vmatmul.mubr.msk.bf16.vlgmr.msra.gmra.mrb[0].mxu1 %vm138_vm2, %v98_v17 }
 0x1b6   :  { %v176_v20 = vpop.f32.mrb[0].mxu1 }
 0x1b7   :  { %v177_v21 = vadd.f32 %v322_v19, %v176_v20  ;;  %v361_v22 = vpop.f32.mrb[1].mxu1 }
 0x1b8   :  { %v179_v23 = vpop.f32.mrb[2].mxu1 }
 0x1b9   :  { %v182_v24 = vmax.f32 %v177_v21, 0.0  ;;  %v362_v25 = vpop.f32.mrb[3].mxu1 }
 0x1bb   :  { %v183_v26 = vpack.c.bf16 %v182_v24, %v182_v24 }
 0x1bd   :  { %368 = vmatmul.mubr.msk.bf16.vlgmr.msra.gmra.mrb[4].mxu0 %vm53_vm1, %v183_v26 }
 0x290   :  { %v244_v28 = vpop.f32.mrb[4].mxu0 }
 0x291   :  { %v369_v29 = vpop.f32.mrb[5].mxu0  ;;  %v245_v30 = vadd.f32 %v328_v27, %v244_v28 }
 0x292   :  { %v247_v31 = vpop.f32.mrb[6].mxu0 }
 0x293   :  { %250 = vxpose.xlu0.b32.start.end [1/1] (short) (narrow) %v245_v30, 8  ;;  %v370_v32 = vpop.f32.mrb[7].mxu0 }
 0x313   :  { %v266_v33 = vpop.trf.xlu0 }
 0x314   :  { %v283_v34 = vsel %vm282_vm3, %v266_v33, -inf }
 0x315   :  { %v284_v35 = vrot.slane %v283_v34, 4 }
 0x317   :  { %v285_v36 = vmax.f32 %v283_v34, %v284_v35 }
 0x319   :  { %v286_v37 = vrot.slane %v285_v36, 2 }
 0x31b   :  { %v287_v38 = vmax.f32 %v285_v36, %v286_v37 }
 0x31d   :  { %v288_v39 = vrot.slane %v287_v38, 1 }
 0x31f   :  { %v289_v40 = vmax.f32 %v287_v38, %v288_v39 }
 0x321   :  { %v290_v41 = vsub.f32 %v266_v33, %v289_v40 }
 0x323   :  { %v291_v42 = vmul.f32 1.442695, %v290_v41 }
 0x325   :  { %382 = vpow2.f32 %v291_v42 }
 0x32f   :  { %v383_v43 = vpop.eup %382 }
 0x330   :  { %v293_v44 = vsel %vm282_vm3, %v383_v43, 0.0 }
 0x331   :  { %v294_v45 = vrot.slane %v293_v44, 4 }
 0x333   :  { %v295_v46 = vadd.f32 %v294_v45, %v293_v44 }
 0x335   :  { %v296_v47 = vrot.slane %v295_v46, 2 }
 0x337   :  { %v297_v48 = vadd.f32 %v296_v47, %v295_v46 }
 0x339   :  { %v298_v49 = vrot.slane %v297_v48, 1 }
 0x33b   :  { %v299_v50 = vadd.f32 %v298_v49, %v297_v48 }
 0x33d   :  { %384 = vlog2.f32 %v299_v50 }
 0x347   :  { %v385_v51 = vpop.eup %384 }
 0x348   :  { %v301_v52 = vmul.f32 0.6931472, %v385_v51 }
 0x34a   :  { %v302_v53 = vsub.f32 %v290_v41, %v301_v52 }
 0x34c   :  { %303 = vst.msk [vmem:[#allocation2] sm:$0xf] %vm282_vm3, %v302_v53 }
 0x34d   :  { %397 = shalt.err (!%p394_p4)
}
 0x34e   :  { %s398_s23 = scalar_lea.hbm %s516_s7, 64 }
 0x34f   :  { %p399_p5 = scmp.ne.s32.totalorder %s516_s7, %s398_s23  ;;  %p402_p6 = scmp.lt.u32.totalorder %s398_s23, %s516_s7 }
 0x351   :  { %p404_p7 = pnand %p402_p6, %p399_p5 }
 0x353   :  { %407 = shalt.err (!%p404_p7)
}
 0x354   :  { %313 = dma.vmem_to_hbm [thread:$0]  %s311_s5, 64, %s516_s7, [#allocation3]  }
 0x355   :  { %408 = dma.done.wait [#allocation3], 64  }
 0x356   :  { %409 = vsyncadd [#allocation3], 4294967232 }
 0x357   :  { %317 = vsyncpa [#allocation3], 1 }

</bundles_post_ra>
